<compile_context>
chip_gen: v7x
topology: tpu7x:2x2x1
jax: 0.10.0
libtpu: 0.0.40
codegen_flags: <defaults>
</compile_context>

<pallas_src>
import functools

import jax
import jax.numpy as jnp
from jax import lax
from jax.experimental import pallas as pl
from jax.experimental.pallas import tpu as pltpu


def valuenet_kernel(xt_ref, w1t_ref, b1_ref, w2_ref, b2_ref, o_ref, *, chunk):
    """One batch tile, processed `chunk` lanes at a time.

    xt_ref : (S, TB)  states, batch in lanes
    w1t_ref: (H, S)   fc1 weight, transposed (hidden in sublanes)
    b1_ref : (H, 1)   fc1 bias
    w2_ref : (H, 1)   fc2 weight
    b2_ref : (1, 1)   fc2 bias (SMEM scalar)
    o_ref  : (1, TB)  values, batch in lanes (lane-dense stores)
    """
    w1t = w1t_ref[...]                      # (H, S)  VMEM-resident
    b1 = b1_ref[...]                        # (H, 1)
    w2 = w2_ref[...]                        # (H, 1)
    b2 = b2_ref[0, 0]                       # scalar

    tb = o_ref.shape[-1]
    n_chunks = tb // chunk                  # wrapper guarantees divisibility

    def body(c, carry):
        off = pl.multiple_of(c * chunk, chunk)
        xc = xt_ref[:, pl.ds(off, chunk)]                            # (S, chunk)
        # fc1 on the MXU (vector-extended slot), f32 accumulate.
        h = jnp.dot(w1t, xc, preferred_element_type=jnp.float32)     # (H, chunk)
        h = jnp.maximum(h + b1, 0.0)                                 # VPU
        # fc2: VPU multiply + XLU sublane reduce -> lane-dense (1, chunk).
        v = jnp.sum(h * w2, axis=0, keepdims=True) + b2
        o_ref[:, pl.ds(off, chunk)] = v.astype(o_ref.dtype)
        return carry

    lax.fori_loop(0, n_chunks, body, 0)


def value_net_forward(x, w1, b1, w2, b2, *, tb_max=32768, chunk=2048,
                      min_pallas_batch=2048):
    """x: (B, S); w1: (S, H); b1: (H,)/(1,H); w2: (H, 1); b2: (1, 1) -> (B, 1)."""
    B, S = x.shape
    H = w1.shape[1]

    b1c = b1.reshape(H, 1)
    w2c = w2.reshape(H, 1)
    b2c = b2.reshape(1, 1)

    # Tiny batches: a single fused XLA dot+relu+dot beats any Pallas config.
    if B < min_pallas_batch:
        return jnp.maximum(x @ w1 + b1.reshape(1, H), 0.0) @ w2c + b2c

    # Lane tile: large (amortize per-grid-step overhead), sized for >= 2 grid
    # steps when the batch allows (v7x megacore), and a multiple of the inner
    # compute chunk so the fori_loop divides evenly.
    half = 128 * pl.cdiv(B, 2 * 128)                 # ~half the batch, lane mult
    tb = max(128, min(tb_max, half))
    chunk = max(128, (min(chunk, tb) // 128) * 128)  # <= tb, multiple of 128
    tb = chunk * pl.cdiv(tb, chunk)                  # multiple of chunk (and 128)
    b_pad = tb * pl.cdiv(B, tb)
    num_tiles = b_pad // tb

    # One-off layout prep in the wrapper: batch goes to the lane (minor) axis.
    # TODO(synk): have the producer emit x already as (S, B) (pre-padded along
    # batch) so this extra HBM read+write pass over x disappears.
    xt = jnp.pad(x, ((0, b_pad - B), (0, 0))).T      # (S, b_pad)
    w1t = w1.T                                       # (H, S)

    out = pl.pallas_call(
        functools.partial(valuenet_kernel, chunk=chunk),
        out_shape=jax.ShapeDtypeStruct((1, b_pad), jnp.float32),
        grid=(num_tiles,),
        in_specs=[
            pl.BlockSpec((S, tb), lambda i: (0, i)),       # x tile (pipelined)
            pl.BlockSpec((H, S), lambda i: (0, 0)),        # VMEM-resident weights
            pl.BlockSpec((H, 1), lambda i: (0, 0)),
            pl.BlockSpec((H, 1), lambda i: (0, 0)),
            pl.BlockSpec(memory_space=pltpu.MemorySpace.SMEM),   # scalar b2
        ],
        out_specs=pl.BlockSpec((1, tb), lambda i: (0, i)),
        compiler_params=pltpu.CompilerParams(
            dimension_semantics=("parallel",),             # 2 TCs on v7x
        ),
    )(xt, w1t, b1c, w2c, b2c)

    return out.reshape(b_pad, 1)[:B]


def init_params(key, state_dim, hidden_dim):
    # Deterministic init mimicking torch.nn.Linear defaults
    # (uniform(-1/sqrt(fan_in), 1/sqrt(fan_in))).
    k1, k2, k3, k4 = jax.random.split(key, 4)
    bound1 = 1.0 / jnp.sqrt(jnp.float32(state_dim))
    bound2 = 1.0 / jnp.sqrt(jnp.float32(hidden_dim))
    w1 = jax.random.uniform(k1, (state_dim, hidden_dim), jnp.float32, -bound1, bound1)
    b1 = jax.random.uniform(k2, (1, hidden_dim), jnp.float32, -bound1, bound1)
    w2 = jax.random.uniform(k3, (hidden_dim, 1), jnp.float32, -bound2, bound2)
    b2 = jax.random.uniform(k4, (1, 1), jnp.float32, -bound2, bound2)
    return w1, b1, w2, b2


if __name__ == "__main__":
    state_dim, hidden_dim = 4, 32
    key = jax.random.PRNGKey(0)
    k_x, k_p, k_x2 = jax.random.split(key, 3)

    w1, b1, w2, b2 = init_params(k_p, state_dim, hidden_dim)

    def reference(xi):
        h = jnp.maximum(
            jnp.dot(xi, w1, precision=jax.lax.Precision.HIGHEST) + b1, 0.0)
        return jnp.dot(h, w2, precision=jax.lax.Precision.HIGHEST) + b2

    # Small demo batch (single tile, single chunk), forced onto the kernel.
    x = jax.random.normal(k_x, (8, state_dim), jnp.float32)
    out = value_net_forward(x, w1, b1, w2, b2, min_pallas_batch=0)
    jax.block_until_ready(out)
    assert out.shape == (8, 1)
    assert jnp.allclose(out, reference(x), atol=1e-5, rtol=1e-5)

    # Slightly larger batch: exercises 2 grid tiles x 2 inner chunks and the
    # batch padding path (384 -> 512 lanes).
    x2 = jax.random.normal(k_x2, (384, state_dim), jnp.float32)
    out2 = value_net_forward(x2, w1, b1, w2, b2, chunk=128, min_pallas_batch=0)
    jax.block_until_ready(out2)
    assert out2.shape == (384, 1)
    assert jnp.allclose(out2, reference(x2), atol=1e-5, rtol=1e-5)

    print("KERNEL_OK")
</pallas_src>

<mosaic_0001>
module attributes {stable_mosaic.version = 11 : i64} {
  func.func @valuenet_kernel(%arg0: i32, %arg1: memref<4x128xf32, #tpu.memory_space<vmem>>, %arg2: memref<32x4xf32, #tpu.memory_space<vmem>>, %arg3: memref<32x1xf32, #tpu.memory_space<vmem>>, %arg4: memref<32x1xf32, #tpu.memory_space<vmem>>, %arg5: memref<1x1xf32, #tpu.memory_space<smem>>, %arg6: memref<1x128xf32, #tpu.memory_space<vmem>>) attributes {dimension_semantics = [#tpu.dimension_semantics<parallel>], iteration_bounds = array<i64: 1>, scalar_prefetch = 0 : i64, scratch_operands = 0 : i64, tpu.core_type = #tpu.core_type<tc>, window_params = [{transform_indices = @transform_0, window_bounds = array<i64: 4, 128>}, {pipeline_mode = #tpu.pipeline_mode<synchronous>, transform_indices = @transform_1, window_bounds = array<i64: 32, 4>}, {pipeline_mode = #tpu.pipeline_mode<synchronous>, transform_indices = @transform_2, window_bounds = array<i64: 32, 1>}, {pipeline_mode = #tpu.pipeline_mode<synchronous>, transform_indices = @transform_3, window_bounds = array<i64: 32, 1>}, {transform_indices = @transform_4, window_bounds = array<i64: 1, 1>}, {transform_indices = @transform_5, window_bounds = array<i64: 1, 128>}]} {
    %c0 = arith.constant 0 : index
    %c0_0 = arith.constant 0 : index
    %0 = vector.load %arg2[%c0, %c0_0] : memref<32x4xf32, #tpu.memory_space<vmem>>, vector<32x4xf32>
    %c0_1 = arith.constant 0 : index
    %c0_2 = arith.constant 0 : index
    %1 = vector.load %arg3[%c0_1, %c0_2] : memref<32x1xf32, #tpu.memory_space<vmem>>, vector<32x1xf32>
    %c0_3 = arith.constant 0 : index
    %c0_4 = arith.constant 0 : index
    %2 = vector.load %arg4[%c0_3, %c0_4] : memref<32x1xf32, #tpu.memory_space<vmem>>, vector<32x1xf32>
    %c0_5 = arith.constant 0 : index
    %c0_6 = arith.constant 0 : index
    %3 = memref.load %arg5[%c0_5, %c0_6] : memref<1x1xf32, #tpu.memory_space<smem>>
    %c0_i32 = arith.constant 0 : i32
    %c128_i32 = arith.constant 128 : i32
    %4 = arith.muli %c0_i32, %c128_i32 : i32
    %5 = tpu.assume_multiple %4, 128 : i32
    %c0_7 = arith.constant 0 : index
    %6 = arith.index_cast %5 : i32 to index
    %7 = vector.load %arg1[%c0_7, %6] : memref<4x128xf32, #tpu.memory_space<vmem>>, vector<4x128xf32>
    %cst = arith.constant dense<0.000000e+00> : vector<32x128xf32>
    %8 = tpu.matmul %0, %7, %cst {dimension_numbers = #tpu.dot_dimension_numbers<[1], [0], [0], [1], [0, 0, 1, 1], [], []>} : vector<32x4xf32>, vector<4x128xf32>, vector<32x128xf32> -> vector<32x128xf32>
    %9 = vector.broadcast %1 : vector<32x1xf32> to vector<32x128xf32>
    %10 = arith.addf %8, %9 : vector<32x128xf32>
    %cst_8 = arith.constant 0.000000e+00 : f32
    %11 = vector.broadcast %cst_8 : f32 to vector<32x128xf32>
    %12 = arith.maximumf %10, %11 : vector<32x128xf32>
    %13 = vector.broadcast %2 : vector<32x1xf32> to vector<32x128xf32>
    %14 = arith.mulf %12, %13 : vector<32x128xf32>
    %cst_9 = arith.constant dense<0.000000e+00> : vector<128xf32>
    %15 = vector.multi_reduction <add>, %14, %cst_9 [0] : vector<32x128xf32> to vector<128xf32>
    %16 = vector.shape_cast %15 : vector<128xf32> to vector<1x128xf32>
    %17 = vector.broadcast %3 : f32 to vector<1x128xf32>
    %18 = arith.addf %16, %17 : vector<1x128xf32>
    %c0_10 = arith.constant 0 : index
    %19 = arith.index_cast %5 : i32 to index
    %20 = vector.load %arg6[%c0_10, %19] : memref<1x128xf32, #tpu.memory_space<vmem>>, vector<1x128xf32>
    tpu.vector_store %arg6[%c0_10, %19], %18 {strides = array<i32>} : memref<1x128xf32, #tpu.memory_space<vmem>>, vector<1x128xf32>,
    %c1_i32 = arith.constant 1 : i32
    return
  }
  func.func @transform_0(%arg0: i32) -> (i32, i32) {
    %c0_i32 = arith.constant 0 : i32
    %c0_i32_0 = arith.constant 0 : i32
    return %c0_i32, %arg0 : i32, i32
  }
  func.func @transform_1(%arg0: i32) -> (i32, i32) {
    %c0_i32 = arith.constant 0 : i32
    %c0_i32_0 = arith.constant 0 : i32
    %c0_i32_1 = arith.constant 0 : i32
    return %c0_i32, %c0_i32_0 : i32, i32
  }
  func.func @transform_2(%arg0: i32) -> (i32, i32) {
    %c0_i32 = arith.constant 0 : i32
    %c0_i32_0 = arith.constant 0 : i32
    %c0_i32_1 = arith.constant 0 : i32
    return %c0_i32, %c0_i32_0 : i32, i32
  }
  func.func @transform_3(%arg0: i32) -> (i32, i32) {
    %c0_i32 = arith.constant 0 : i32
    %c0_i32_0 = arith.constant 0 : i32
    %c0_i32_1 = arith.constant 0 : i32
    return %c0_i32, %c0_i32_0 : i32, i32
  }
  func.func @transform_4(%arg0: i32) -> (i32, i32) {
    %c0_i32 = arith.constant 0 : i32
    %c0_i32_0 = arith.constant 0 : i32
    %c0_i32_1 = arith.constant 0 : i32
    return %c0_i32, %c0_i32_0 : i32, i32
  }
  func.func @transform_5(%arg0: i32) -> (i32, i32) {
    %c0_i32 = arith.constant 0 : i32
    %c0_i32_0 = arith.constant 0 : i32
    return %c0_i32, %arg0 : i32, i32
  }
}

</mosaic_0001>

<bundles_post_ra>
// kernel: tpu_custom_call.1
= control target key start
LH: loop header
LB: loop body
LE: loop exit
PB: predicated region body
PF: predicated region fallthrough
CT: control target
= control target key end

     0   :  { %vm69_vm0 = vcmask 1043456   ;;  %vm56_vm1 = vcmask 31744   ;;  %s346_s0 = inlined_call_operand.vmem [shape: f32[4,128], index: 0, kind: input, shape index: {}]   ;;  %s347_s1 = inlined_call_operand.vmem [shape: f32[32,4], index: 1, kind: input, shape index: {}]   ;;  %s348_s2 = inlined_call_operand.vmem [shape: f32[32,1], index: 2, kind: input, shape index: {}]   ;;  %s349_s3 = inlined_call_operand.vmem [shape: f32[32,1], index: 3, kind: input, shape index: {}]   ;;  %s350_s4 = inlined_call_operand.<no memory space> [shape: f32[1,1], index: 4, kind: input, shape index: {}]   ;;  %s351_s5 = inlined_call_operand.hbm [shape: f32[1,128], index: 5, kind: output, shape index: {}]  }
   0x1   :  { %v35_v0 = vld [vmem:[%s346_s0] sm:$0xf]  ;;  %v24_v2 = vld [vmem:[%s347_s1 + $0x10] sm:$0xff]  ;;  %v23_v3 = vld [vmem:[%s347_s1 + $0x8] sm:$0xff] }
   0x2   :  { %v22_v1 = vld [vmem:[%s347_s1] sm:$0xff]  ;;  %222 = vmatprep.subr.msk.mxu0 %vm69_vm0, %v35_v0  ;;  %230 = vmatprep.subr.msk.mxu1 %vm69_vm0, %v35_v0  ;;  %v25_v4 = vld [vmem:[%s347_s1 + $0x18] sm:$0xff]  ;;  %v28_v6 = vld [vmem:[%s348_s2 + $0x10] sm:$0xff] }
   0x3   :  { %223 = vmatpush3.msk.msra.mxu0 %vm69_vm0, %v35_v0  ;;  %231 = vmatpush3.msk.msra.mxu1 %vm69_vm0, %v35_v0  ;;  %v26_v5 = vld [vmem:[%s348_s2] sm:$0xff] }
   0x4   :  { %224 = vmatprep.mubr.msk.f32.mxu0 %vm56_vm1, %v22_v1  ;;  %227 = vmatprep.mubr.msk.f32.mxu1 %vm56_vm1, %v24_v2 }
   0x5   :  { %225 = vmatmul.mubr.msk.f32.vlgmr.msra.gmra.mrb[0].mxu0 %vm56_vm1, %v23_v3  ;;  %228 = vmatmul.mubr.msk.f32.vlgmr.msra.gmra.mrb[0].mxu1 %vm56_vm1, %v25_v4 }
   0x6   :  { %11 = vsyncpa [#allocation4], 0  ;;  %v260_v7 = vmov 0   ;;  %v27_v8 = vld [vmem:[%s348_s2 + $0x8] sm:$0xff]  ;;  %v29_v9 = vld [vmem:[%s348_s2 + $0x18] sm:$0xff]  ;;  %v195_v46 = vstv %s350_s4  ;;  %s261_s17 = smov [#allocation3]  }
   0x7   :  { %234 = vset.pattern.permute.xlu0 %v260_v7  ;;  %235 = vset.pattern.permute.xlu1 %v260_v7  ;;  %v30_v10 = vld [vmem:[%s349_s3] sm:$0xff]  ;;  %v31_v11 = vld [vmem:[%s349_s3 + $0x8] sm:$0xff]  ;;  %v32_v12 = vld [vmem:[%s349_s3 + $0x10] sm:$0xff]  ;;  %s204_s18 = sshll.u32 %s261_s17, 4  ;;  %s205_s18 = int_to_ptr.vmem [resolvable:$true] %s204_s18 }
   0x8   :  { %38 = vperm.xlu0 %234, %v26_v5   ;;  %48 = vperm.xlu1 %235, %v28_v6   ;;  %v33_v13 = vld [vmem:[%s349_s3 + $0x18] sm:$0xff]  ;;  %s236_s19 = scalar_lea.vmem %s205_s18, 16  ;;  %s240_s20 = scalar_lea.vmem %s205_s18, 32 }
   0x9   :  { %p237_p0 = scmp.ne.s32.totalorder %s205_s18, %s236_s19  ;;  %p241_p1 = scmp.lt.s32.totalorder %s205_s18, %s205_s18 }
   0xa   :  { %p242_p2 = scmp.lt.s32.totalorder %s240_s20, %s236_s19 }
   0xc   :  { %43 = vperm.xlu0 %234, %v27_v8   ;;  %53 = vperm.xlu1 %235, %v29_v9   ;;  %p243_p3 = por %p242_p2, %p241_p1 }
   0xe   :  { %p244_p4 = pnand %p243_p3, %p237_p0 }
  0x10   :  { %164 = vperm.xlu0 %234, %v30_v10   ;;  %169 = vperm.xlu1 %235, %v31_v11  }
  0x14   :  { %174 = vperm.xlu0 %234, %v32_v12   ;;  %179 = vperm.xlu1 %235, %v33_v13  }
  0x87   :  { %v39_v14 = vpop.permute.xlu0 %38  ;;  %v49_v15 = vpop.permute.xlu1 %48 }
  0x8b   :  { %v44_v16 = vpop.permute.xlu0 %43  ;;  %v54_v17 = vpop.permute.xlu1 %53 }
  0x8f   :  { %v165_v18 = vpop.permute.xlu0 %164  ;;  %v170_v27 = vpop.permute.xlu1 %169 }
  0x93   :  { %v175_v34 = vpop.permute.xlu0 %174  ;;  %v180_v37 = vpop.permute.xlu1 %179 }
  0xd8   :  { %v226_v19 = vpop.f32.mrb[0].mxu0  ;;  %v229_v20 = vpop.f32.mrb[0].mxu1 }
  0xd9   :  { %v145_v21 = vadd.f32 %v226_v19, %v44_v16  ;;  %v139_v22 = vpop.f32.mrb[1].mxu0  ;;  %v149_v23 = vpop.f32.mrb[1].mxu1  ;;  %v155_v24 = vadd.f32 %v229_v20, %v54_v17 }
  0xda   :  { %v140_v25 = vadd.f32 %v139_v22, %v39_v14  ;;  %v150_v26 = vadd.f32 %v149_v23, %v49_v15 }
  0xdb   :  { %v159_v28 = vmax.f32 %v145_v21, 0.0  ;;  %v161_v32 = vmax.f32 %v155_v24, 0.0 }
  0xdc   :  { %v158_v29 = vmax.f32 %v140_v25, 0.0  ;;  %v160_v30 = vmax.f32 %v150_v26, 0.0 }
  0xdd   :  { %v183_v31 = vmul.f32 %v170_v27, %v159_v28  ;;  %v185_v38 = vmul.f32 %v180_v37, %v161_v32 }
  0xde   :  { %v182_v33 = vmul.f32 %v165_v18, %v158_v29  ;;  %v184_v36 = vmul.f32 %v175_v34, %v160_v30 }
  0xe0   :  { %v186_v35 = vadd.f32 %v183_v31, %v182_v33 }
  0xe2   :  { %v187_v39 = vadd.f32 %v186_v35, %v184_v36 }
  0xe4   :  { %v188_v40 = vadd.f32 %v187_v39, %v185_v38 }
  0xe6   :  { %v189_v41 = vrot.slane %v188_v40, 4 }
  0xe8   :  { %v190_v42 = vadd.f32 %v189_v41, %v188_v40 }
  0xea   :  { %v191_v43 = vrot.slane %v190_v42, 2 }
  0xec   :  { %v192_v44 = vadd.f32 %v191_v43, %v190_v42 }
  0xee   :  { %v193_v45 = vrot.slane %v192_v44, 1 }
  0xf0   :  { %v194_v47 = vadd.f32 %v193_v45, %v192_v44 }
  0xf2   :  { %v196_v48 = vadd.f32 %v195_v46, %v194_v47 }
  0xf4   :  { %197 = vst [vmem:[#allocation3] sm:$0x1] %v196_v48 }
  0xf5   :  { %247 = shalt.err (!%p244_p4)
}
  0xf6   :  { %s248_s23 = scalar_lea.hbm %s351_s5, 16 }
  0xf7   :  { %p249_p5 = scmp.ne.s32.totalorder %s351_s5, %s248_s23  ;;  %p252_p6 = scmp.lt.u32.totalorder %s248_s23, %s351_s5 }
  0xf9   :  { %p254_p7 = pnand %p252_p6, %p249_p5 }
  0xfb   :  { %257 = shalt.err (!%p254_p7)
}
  0xfc   :  { %207 = dma.vmem_to_hbm [thread:$0]  %s205_s18, 16, %s351_s5, [#allocation4]  }
  0xfd   :  { %258 = dma.done.wait [#allocation4], 16  }
  0xfe   :  { %259 = vsyncadd [#allocation4], 4294967280 }
  0xff   :  { %211 = vsyncpa [#allocation4], 1 }

</bundles_post_ra>
